<compile_context>
chip_gen: v7x
topology: tpu7x:2x2x1
jax: 0.10.0
libtpu: 0.0.40
codegen_flags: <defaults>
</compile_context>

<pallas_src>
import functools

import jax
import jax.numpy as jnp
from jax.experimental import pallas as pl
from jax.experimental.pallas import tpu as pltpu


# --------------------------------------------------------------------------
# helpers
# --------------------------------------------------------------------------
def _round_up(n, m):
    return ((n + m - 1) // m) * m


def _cdiv(a, b):
    return -(-a // b)


def _apply_activation(h, activation):
    if activation == 'relu':
        return jnp.maximum(h, 0.0)
    elif activation == 'tanh':
        return jnp.tanh(h)
    elif activation == 'leakyrelu':
        return jnp.where(h >= 0, h, 0.01 * h)   # nn.LeakyReLU default slope
    elif activation == 'sigmoid':
        return jax.nn.sigmoid(h)
    else:
        raise NotImplementedError(f"Activation '{activation}' not implemented")


# --------------------------------------------------------------------------
# kernel
# --------------------------------------------------------------------------
def _mlp_kernel(*refs, num_layers, activation, activate_final, layer_norm):
    """refs = (x_tile, w0, b0, ..., w_{L-1}, b_{L-1}, [gamma, beta], out_tile).

    Weights are bf16 with hidden dims zero-padded to 128 (padded ROWS are
    zero, so padded-lane activations never reach real lanes).  Biases, LN
    params, accumulators and LN statistics are f32.
    """
    x_ref = refs[0]
    out_ref = refs[-1]
    p = refs[1:-1]

    h_mxu = x_ref[...].astype(jnp.bfloat16)            # cast in VMEM, not HBM
    acc = None
    for k in range(num_layers):
        w = p[2 * k][...]                              # bf16 (K_k, N_k)
        b = p[2 * k + 1][...]                          # f32  (1, N_k)
        acc = jnp.dot(h_mxu, w, preferred_element_type=jnp.float32) + b
        if k != num_layers - 1 or activate_final:
            acc = _apply_activation(acc, activation)
        if k != num_layers - 1:
            h_mxu = acc.astype(jnp.bfloat16)           # bf16 only for the MXU

    h = acc                                            # f32, true out_dim lanes
    if layer_norm:
        gamma = p[2 * num_layers][...]                 # f32 (1, out_dim)
        beta = p[2 * num_layers + 1][...]              # f32 (1, out_dim)
        inv_n = 1.0 / h.shape[-1]
        s = jnp.sum(h, axis=-1, keepdims=True)         # fused single sweep
        ss = jnp.sum(h * h, axis=-1, keepdims=True)
        mean = s * inv_n
        var = jnp.maximum(ss * inv_n - mean * mean, 0.0)
        h = (h - mean) * jax.lax.rsqrt(var + 1e-5) * gamma + beta

    out_ref[...] = h.astype(out_ref.dtype)


# --------------------------------------------------------------------------
# one-time parameter preparation (out of the hot path)
# --------------------------------------------------------------------------
def prepare_mlp_params(layer_params, ln_params=None, *,
                       param_dtype=jnp.bfloat16, pad_to=128):
    """Transpose weights to (in, out), cast to bf16, zero-pad only the HIDDEN
    feature dims to multiples of `pad_to`.  The first layer's in-dim and the
    last layer's out-dim are kept at their true sizes so x / out need no
    feature padding in HBM.  Call this ONCE at model setup.

    layer_params : list of (W, b), W in PyTorch convention (out, in)
    ln_params    : optional (gamma, beta), each of shape (width[-1],)
    """
    num_layers = len(layer_params)
    assert num_layers >= 1, 'Need at least one layer in the network!'
    in_dim = layer_params[0][0].shape[1]
    out_dim = layer_params[-1][0].shape[0]

    tensors = []
    k_dim = in_dim                     # first layer contracts over TRUE in_dim
    max_width = in_dim
    for k, (w, b) in enumerate(layer_params):
        o, i = w.shape
        if k > 0:
            assert i == layer_params[k - 1][0].shape[0], 'widths must chain'
        assert i <= k_dim
        n_dim = o if k == num_layers - 1 else _round_up(o, pad_to)
        wt = jnp.zeros((k_dim, n_dim), param_dtype)
        wt = wt.at[:i, :o].set(jnp.asarray(w, jnp.float32).T.astype(param_dtype))
        # INVARIANT: rows i..k_dim-1 and cols o..n_dim-1 remain ZERO (header).
        bp = jnp.zeros((1, n_dim), jnp.float32)
        bp = bp.at[0, :o].set(jnp.asarray(b, jnp.float32))
        tensors += [wt, bp]
        max_width = max(max_width, n_dim)
        k_dim = n_dim

    layer_norm = ln_params is not None
    if layer_norm:
        gamma, beta = ln_params
        tensors.append(jnp.asarray(gamma, jnp.float32).reshape(1, out_dim))
        tensors.append(jnp.asarray(beta, jnp.float32).reshape(1, out_dim))

    return {
        'tensors': tensors,
        'num_layers': num_layers,
        'layer_norm': layer_norm,
        'in_dim': in_dim,
        'out_dim': out_dim,
        'max_width': max_width,
    }


# --------------------------------------------------------------------------
# tile selection (VMEM-budget aware; grows the tile up to the budget)
# --------------------------------------------------------------------------
def _pick_tile_b(batch, prepped, x_itemsize, vmem_cap, tile_b_req):
    budget = int(0.7 * vmem_cap)
    param_bytes = sum(t.size * t.dtype.itemsize for t in prepped['tensors'])
    # Budget params at 2 buffers: covers the non-Buffered(1) fallback path.
    resident = 2 * param_bytes
    if resident > budget:
        # TODO(synk): stream oversized weights via a K/N grid instead of failing.
        raise NotImplementedError('MLP weights exceed the VMEM budget')

    in_dim, out_dim = prepped['in_dim'], prepped['out_dim']
    max_w = prepped['max_width']
    per_row = (2 * in_dim * x_itemsize        # double-buffered x tile
               + 2 * out_dim * 4              # double-buffered f32 out tile
               + 2 * max_w * 4 + max_w * 2)   # live f32 acc + bf16 MXU operand
    tb_cap = (budget - resident) // max(per_row, 1)

    tb = tb_cap if tile_b_req is None else min(tile_b_req, tb_cap)
    tb = min(tb, 8192)
    if batch >= 32:
        # >= 2 grid steps so ("parallel",) can use both TensorCores on v7x.
        tb = min(tb, _round_up(_cdiv(batch, 2), 16))
    tb = min(tb, _round_up(batch, 16))
    tb = max(16, (tb // 16) * 16)              # multiple of 16 (bf16 packing)
    return int(tb)


# --------------------------------------------------------------------------
# wrapper
# --------------------------------------------------------------------------
def mlp_forward(x, prepped, *, activation='relu', activate_final=False,
                tile_b=None):
    """Run the fused MLP Pallas kernel on x of shape (batch, in_dim)."""
    batch, in_dim = x.shape
    assert in_dim == prepped['in_dim']
    out_dim = prepped['out_dim']
    tensors = prepped['tensors']

    try:
        vmem_cap = int(pltpu.get_tpu_info().vmem_capacity_bytes)
    except Exception:
        vmem_cap = 64 << 20            # v7x per-TC capacity; conservative
    tb = _pick_tile_b(batch, prepped, x.dtype.itemsize, vmem_cap, tile_b)
    grid_n = _cdiv(batch, tb)
    batch_pad = grid_n * tb

    # Only pad batch ROWS, and only when needed; features are never padded.
    xp = x if batch_pad == batch else jnp.pad(x, ((0, batch_pad - batch), (0, 0)))

    param_bytes = sum(t.size * t.dtype.itemsize for t in tensors)
    per_row = (2 * in_dim * x.dtype.itemsize + 2 * out_dim * 4
               + 2 * prepped['max_width'] * 4 + prepped['max_width'] * 2)
    need = 2 * param_bytes + tb * per_row
    vmem_limit = int(min(max(int(1.5 * need), 32 << 20), 0.9 * vmem_cap))

    kernel = functools.partial(
        _mlp_kernel,
        num_layers=prepped['num_layers'],
        activation=activation,
        activate_final=activate_final,
        layer_norm=prepped['layer_norm'],
    )

    def run(use_buffered):
        def param_spec(shape):
            if use_buffered:
                # constant index_map -> single buffer is enough
                return pl.BlockSpec(shape, lambda i: (0, 0),
                                    pipeline_mode=pl.Buffered(1))
            return pl.BlockSpec(shape, lambda i: (0, 0))

        in_specs = [pl.BlockSpec((tb, in_dim), lambda i: (i, 0))]
        in_specs += [param_spec(t.shape) for t in tensors]
        out_specs = pl.BlockSpec((tb, out_dim), lambda i: (i, 0))

        out = pl.pallas_call(
            kernel,
            out_shape=jax.ShapeDtypeStruct((batch_pad, out_dim), jnp.float32),
            grid=(grid_n,),
            in_specs=in_specs,
            out_specs=out_specs,
            compiler_params=pltpu.CompilerParams(
                dimension_semantics=("parallel",),
                vmem_limit_bytes=vmem_limit,
            ),
        )(xp, *tensors)
        return jax.block_until_ready(out)

    use_buffered = hasattr(pl, "Buffered")
    try:
        out = run(use_buffered)
    except Exception:
        if not use_buffered:
            raise
        out = run(False)   # fall back to default double-buffered param specs

    return out if batch_pad == batch else out[:batch]


# --------------------------------------------------------------------------
# reference + test
# --------------------------------------------------------------------------
def _init_params(key, width):
    """nn.Linear-style init (U[-1/sqrt(fan_in), +1/sqrt(fan_in)])."""
    params = []
    for k in range(len(width) - 1):
        key, kw, kb = jax.random.split(key, 3)
        bound = 1.0 / jnp.sqrt(width[k])
        w = jax.random.uniform(kw, (width[k + 1], width[k]),
                               minval=-bound, maxval=bound, dtype=jnp.float32)
        b = jax.random.uniform(kb, (width[k + 1],),
                               minval=-bound, maxval=bound, dtype=jnp.float32)
        params.append((w, b))
    return key, params


def _reference_mlp(x, layer_params, ln_params, activation, activate_final,
                   param_dtype=jnp.bfloat16):
    """Pure-JAX reference mirroring the kernel's precision (bf16 weights and
    MXU operands, f32 accumulation, f32 LayerNorm)."""
    h = jnp.asarray(x, jnp.float32)
    n = len(layer_params)
    for k, (w, b) in enumerate(layer_params):
        wq = jnp.asarray(w, jnp.float32).T.astype(param_dtype)
        h = jnp.dot(h.astype(param_dtype), wq,
                    preferred_element_type=jnp.float32) + jnp.asarray(b, jnp.float32)
        if k != n - 1 or activate_final:
            h = _apply_activation(h, activation)
    if ln_params is not None:
        gamma, beta = ln_params
        mean = jnp.mean(h, axis=-1, keepdims=True)
        var = jnp.mean(jnp.square(h - mean), axis=-1, keepdims=True)
        h = (h - mean) * jax.lax.rsqrt(var + 1e-5) * gamma + beta
    return h


if __name__ == "__main__":
    key = jax.random.PRNGKey(0)

    # width spec as in MLP(width=[16, 32, 32, 8])
    width = [16, 32, 32, 8]
    batch = 8

    key, params = _init_params(key, width)
    key, kx = jax.random.split(key)
    x = jax.random.normal(kx, (batch, width[0]), dtype=jnp.float32)

    # --- config 1: defaults (relu, no layer_norm, no activate_final) -------
    prepped1 = prepare_mlp_params(params, None)
    out1 = mlp_forward(x, prepped1, activation='relu', activate_final=False)
    jax.block_until_ready(out1)
    ref1 = _reference_mlp(x, params, None, 'relu', False)
    assert out1.shape == (batch, width[-1])
    assert jnp.allclose(out1, ref1, atol=1e-4, rtol=1e-3)

    # --- config 2: tanh, activate_final=True, layer_norm=True --------------
    key, kg, kb2 = jax.random.split(key, 3)
    gamma = jax.random.uniform(kg, (width[-1],), minval=0.5, maxval=1.5,
                               dtype=jnp.float32)
    beta = 0.1 * jax.random.normal(kb2, (width[-1],), dtype=jnp.float32)
    prepped2 = prepare_mlp_params(params, (gamma, beta))
    out2 = mlp_forward(x, prepped2, activation='tanh', activate_final=True)
    jax.block_until_ready(out2)
    ref2 = _reference_mlp(x, params, (gamma, beta), 'tanh', True)
    assert jnp.allclose(out2, ref2, atol=1e-4, rtol=1e-3)

    # --- config 3: batch=50 -> multi-step grid + conditional row padding ---
    key, kx3 = jax.random.split(key)
    x3 = jax.random.normal(kx3, (50, width[0]), dtype=jnp.float32)
    out3 = mlp_forward(x3, prepped1, activation='sigmoid', activate_final=False)
    jax.block_until_ready(out3)
    ref3 = _reference_mlp(x3, params, None, 'sigmoid', False)
    assert out3.shape == (50, width[-1])
    assert jnp.allclose(out3, ref3, atol=1e-4, rtol=1e-3)

    print("KERNEL_OK")
</pallas_src>

<mosaic_0001>
module attributes {stable_mosaic.version = 11 : i64} {
  func.func @_mlp_kernel(%arg0: i32, %arg1: memref<16x16xf32, #tpu.memory_space<vmem>>, %arg2: memref<16x128xbf16, #tpu.memory_space<vmem>>, %arg3: memref<1x128xf32, #tpu.memory_space<vmem>>, %arg4: memref<128x128xbf16, #tpu.memory_space<vmem>>, %arg5: memref<1x128xf32, #tpu.memory_space<vmem>>, %arg6: memref<128x8xbf16, #tpu.memory_space<vmem>>, %arg7: memref<1x8xf32, #tpu.memory_space<vmem>>, %arg8: memref<16x8xf32, #tpu.memory_space<vmem>>) attributes {dimension_semantics = [#tpu.dimension_semantics<parallel>], iteration_bounds = array<i64: 1>, scalar_prefetch = 0 : i64, scratch_operands = 0 : i64, tpu.core_type = #tpu.core_type<tc>, window_params = [{transform_indices = @transform_0, window_bounds = array<i64: 16, 16>}, {pipeline_mode = #tpu.pipeline_mode<synchronous>, transform_indices = @transform_1, window_bounds = array<i64: 16, 128>}, {pipeline_mode = #tpu.pipeline_mode<synchronous>, transform_indices = @transform_2, window_bounds = array<i64: 1, 128>}, {pipeline_mode = #tpu.pipeline_mode<synchronous>, transform_indices = @transform_3, window_bounds = array<i64: 128, 128>}, {pipeline_mode = #tpu.pipeline_mode<synchronous>, transform_indices = @transform_4, window_bounds = array<i64: 1, 128>}, {pipeline_mode = #tpu.pipeline_mode<synchronous>, transform_indices = @transform_5, window_bounds = array<i64: 128, 8>}, {pipeline_mode = #tpu.pipeline_mode<synchronous>, transform_indices = @transform_6, window_bounds = array<i64: 1, 8>}, {transform_indices = @transform_7, window_bounds = array<i64: 16, 8>}]} {
    %c0 = arith.constant 0 : index
    %c0_0 = arith.constant 0 : index
    %0 = vector.load %arg1[%c0, %c0_0] : memref<16x16xf32, #tpu.memory_space<vmem>>, vector<16x16xf32>
    %1 = arith.truncf %0 : vector<16x16xf32> to vector<16x16xbf16>
    %c0_1 = arith.constant 0 : index
    %c0_2 = arith.constant 0 : index
    %2 = vector.load %arg2[%c0_1, %c0_2] : memref<16x128xbf16, #tpu.memory_space<vmem>>, vector<16x128xbf16>
    %c0_3 = arith.constant 0 : index
    %c0_4 = arith.constant 0 : index
    %3 = vector.load %arg3[%c0_3, %c0_4] : memref<1x128xf32, #tpu.memory_space<vmem>>, vector<1x128xf32>
    %cst = arith.constant dense<0.000000e+00> : vector<16x128xf32>
    %4 = tpu.matmul %1, %2, %cst {dimension_numbers = #tpu.dot_dimension_numbers<[1], [0], [0], [1], [0, 0, 1, 1], [], []>} : vector<16x16xbf16>, vector<16x128xbf16>, vector<16x128xf32> -> vector<16x128xf32>
    %5 = vector.broadcast %3 : vector<1x128xf32> to vector<16x128xf32>
    %6 = arith.addf %4, %5 : vector<16x128xf32>
    %cst_5 = arith.constant 0.000000e+00 : f32
    %7 = vector.broadcast %cst_5 : f32 to vector<16x128xf32>
    %8 = arith.maximumf %6, %7 : vector<16x128xf32>
    %9 = arith.truncf %8 : vector<16x128xf32> to vector<16x128xbf16>
    %c0_6 = arith.constant 0 : index
    %c0_7 = arith.constant 0 : index
    %10 = vector.load %arg4[%c0_6, %c0_7] : memref<128x128xbf16, #tpu.memory_space<vmem>>, vector<128x128xbf16>
    %c0_8 = arith.constant 0 : index
    %c0_9 = arith.constant 0 : index
    %11 = vector.load %arg5[%c0_8, %c0_9] : memref<1x128xf32, #tpu.memory_space<vmem>>, vector<1x128xf32>
    %cst_10 = arith.constant dense<0.000000e+00> : vector<16x128xf32>
    %12 = tpu.matmul %9, %10, %cst_10 {dimension_numbers = #tpu.dot_dimension_numbers<[1], [0], [0], [1], [0, 0, 1, 1], [], []>} : vector<16x128xbf16>, vector<128x128xbf16>, vector<16x128xf32> -> vector<16x128xf32>
    %13 = vector.broadcast %11 : vector<1x128xf32> to vector<16x128xf32>
    %14 = arith.addf %12, %13 : vector<16x128xf32>
    %cst_11 = arith.constant 0.000000e+00 : f32
    %15 = vector.broadcast %cst_11 : f32 to vector<16x128xf32>
    %16 = arith.maximumf %14, %15 : vector<16x128xf32>
    %17 = arith.truncf %16 : vector<16x128xf32> to vector<16x128xbf16>
    %c0_12 = arith.constant 0 : index
    %c0_13 = arith.constant 0 : index
    %18 = vector.load %arg6[%c0_12, %c0_13] : memref<128x8xbf16, #tpu.memory_space<vmem>>, vector<128x8xbf16>
    %c0_14 = arith.constant 0 : index
    %c0_15 = arith.constant 0 : index
    %19 = vector.load %arg7[%c0_14, %c0_15] : memref<1x8xf32, #tpu.memory_space<vmem>>, vector<1x8xf32>
    %cst_16 = arith.constant dense<0.000000e+00> : vector<16x8xf32>
    %20 = tpu.matmul %17, %18, %cst_16 {dimension_numbers = #tpu.dot_dimension_numbers<[1], [0], [0], [1], [0, 0, 1, 1], [], []>} : vector<16x128xbf16>, vector<128x8xbf16>, vector<16x8xf32> -> vector<16x8xf32>
    %21 = vector.broadcast %19 : vector<1x8xf32> to vector<16x8xf32>
    %22 = arith.addf %20, %21 : vector<16x8xf32>
    %c0_17 = arith.constant 0 : index
    %c0_18 = arith.constant 0 : index
    %23 = vector.load %arg8[%c0_17, %c0_18] : memref<16x8xf32, #tpu.memory_space<vmem>>, vector<16x8xf32>
    tpu.vector_store %arg8[%c0_17, %c0_18], %22 {strides = array<i32>} : memref<16x8xf32, #tpu.memory_space<vmem>>, vector<16x8xf32>,
    return
  }
  func.func @transform_0(%arg0: i32) -> (i32, i32) {
    %c0_i32 = arith.constant 0 : i32
    %c0_i32_0 = arith.constant 0 : i32
    return %arg0, %c0_i32 : i32, i32
  }
  func.func @transform_1(%arg0: i32) -> (i32, i32) {
    %c0_i32 = arith.constant 0 : i32
    %c0_i32_0 = arith.constant 0 : i32
    %c0_i32_1 = arith.constant 0 : i32
    return %c0_i32, %c0_i32_0 : i32, i32
  }
  func.func @transform_2(%arg0: i32) -> (i32, i32) {
    %c0_i32 = arith.constant 0 : i32
    %c0_i32_0 = arith.constant 0 : i32
    %c0_i32_1 = arith.constant 0 : i32
    return %c0_i32, %c0_i32_0 : i32, i32
  }
  func.func @transform_3(%arg0: i32) -> (i32, i32) {
    %c0_i32 = arith.constant 0 : i32
    %c0_i32_0 = arith.constant 0 : i32
    %c0_i32_1 = arith.constant 0 : i32
    return %c0_i32, %c0_i32_0 : i32, i32
  }
  func.func @transform_4(%arg0: i32) -> (i32, i32) {
    %c0_i32 = arith.constant 0 : i32
    %c0_i32_0 = arith.constant 0 : i32
    %c0_i32_1 = arith.constant 0 : i32
    return %c0_i32, %c0_i32_0 : i32, i32
  }
  func.func @transform_5(%arg0: i32) -> (i32, i32) {
    %c0_i32 = arith.constant 0 : i32
    %c0_i32_0 = arith.constant 0 : i32
    %c0_i32_1 = arith.constant 0 : i32
    return %c0_i32, %c0_i32_0 : i32, i32
  }
  func.func @transform_6(%arg0: i32) -> (i32, i32) {
    %c0_i32 = arith.constant 0 : i32
    %c0_i32_0 = arith.constant 0 : i32
    %c0_i32_1 = arith.constant 0 : i32
    return %c0_i32, %c0_i32_0 : i32, i32
  }
  func.func @transform_7(%arg0: i32) -> (i32, i32) {
    %c0_i32 = arith.constant 0 : i32
    %c0_i32_0 = arith.constant 0 : i32
    return %arg0, %c0_i32 : i32, i32
  }
}

module attributes {stable_mosaic.version = 11 : i64} {
  func.func @_mlp_kernel(%arg0: i32, %arg1: memref<16x16xf32, #tpu.memory_space<vmem>>, %arg2: memref<16x128xbf16, #tpu.memory_space<vmem>>, %arg3: memref<1x128xf32, #tpu.memory_space<vmem>>, %arg4: memref<128x128xbf16, #tpu.memory_space<vmem>>, %arg5: memref<1x128xf32, #tpu.memory_space<vmem>>, %arg6: memref<128x8xbf16, #tpu.memory_space<vmem>>, %arg7: memref<1x8xf32, #tpu.memory_space<vmem>>, %arg8: memref<16x8xf32, #tpu.memory_space<vmem>>) attributes {dimension_semantics = [#tpu.dimension_semantics<parallel>], iteration_bounds = array<i64: 1>, scalar_prefetch = 0 : i64, scratch_operands = 0 : i64, tpu.core_type = #tpu.core_type<tc>, window_params = [{transform_indices = @transform_0, window_bounds = array<i64: 16, 16>}, {pipeline_mode = #tpu.pipeline_mode<synchronous>, transform_indices = @transform_1, window_bounds = array<i64: 16, 128>}, {pipeline_mode = #tpu.pipeline_mode<synchronous>, transform_indices = @transform_2, window_bounds = array<i64: 1, 128>}, {pipeline_mode = #tpu.pipeline_mode<synchronous>, transform_indices = @transform_3, window_bounds = array<i64: 128, 128>}, {pipeline_mode = #tpu.pipeline_mode<synchronous>, transform_indices = @transform_4, window_bounds = array<i64: 1, 128>}, {pipeline_mode = #tpu.pipeline_mode<synchronous>, transform_indices = @transform_5, window_bounds = array<i64: 128, 8>}, {pipeline_mode = #tpu.pipeline_mode<synchronous>, transform_indices = @transform_6, window_bounds = array<i64: 1, 8>}, {transform_indices = @transform_7, window_bounds = array<i64: 16, 8>}]} {
    %c0 = arith.constant 0 : index
    %c0_0 = arith.constant 0 : index
    %0 = vector.load %arg1[%c0, %c0_0] : memref<16x16xf32, #tpu.memory_space<vmem>>, vector<16x16xf32>
    %1 = arith.truncf %0 : vector<16x16xf32> to vector<16x16xbf16>
    %c0_1 = arith.constant 0 : index
    %c0_2 = arith.constant 0 : index
    %2 = vector.load %arg2[%c0_1, %c0_2] : memref<16x128xbf16, #tpu.memory_space<vmem>>, vector<16x128xbf16>
    %c0_3 = arith.constant 0 : index
    %c0_4 = arith.constant 0 : index
    %3 = vector.load %arg3[%c0_3, %c0_4] : memref<1x128xf32, #tpu.memory_space<vmem>>, vector<1x128xf32>
    %cst = arith.constant dense<0.000000e+00> : vector<16x128xf32>
    %4 = tpu.matmul %1, %2, %cst {dimension_numbers = #tpu.dot_dimension_numbers<[1], [0], [0], [1], [0, 0, 1, 1], [], []>} : vector<16x16xbf16>, vector<16x128xbf16>, vector<16x128xf32> -> vector<16x128xf32>
    %5 = vector.broadcast %3 : vector<1x128xf32> to vector<16x128xf32>
    %6 = arith.addf %4, %5 : vector<16x128xf32>
    %cst_5 = arith.constant 0.000000e+00 : f32
    %7 = vector.broadcast %cst_5 : f32 to vector<16x128xf32>
    %8 = arith.maximumf %6, %7 : vector<16x128xf32>
    %9 = arith.truncf %8 : vector<16x128xf32> to vector<16x128xbf16>
    %c0_6 = arith.constant 0 : index
    %c0_7 = arith.constant 0 : index
    %10 = vector.load %arg4[%c0_6, %c0_7] : memref<128x128xbf16, #tpu.memory_space<vmem>>, vector<128x128xbf16>
    %c0_8 = arith.constant 0 : index
    %c0_9 = arith.constant 0 : index
    %11 = vector.load %arg5[%c0_8, %c0_9] : memref<1x128xf32, #tpu.memory_space<vmem>>, vector<1x128xf32>
    %cst_10 = arith.constant dense<0.000000e+00> : vector<16x128xf32>
    %12 = tpu.matmul %9, %10, %cst_10 {dimension_numbers = #tpu.dot_dimension_numbers<[1], [0], [0], [1], [0, 0, 1, 1], [], []>} : vector<16x128xbf16>, vector<128x128xbf16>, vector<16x128xf32> -> vector<16x128xf32>
    %13 = vector.broadcast %11 : vector<1x128xf32> to vector<16x128xf32>
    %14 = arith.addf %12, %13 : vector<16x128xf32>
    %cst_11 = arith.constant 0.000000e+00 : f32
    %15 = vector.broadcast %cst_11 : f32 to vector<16x128xf32>
    %16 = arith.maximumf %14, %15 : vector<16x128xf32>
    %17 = arith.truncf %16 : vector<16x128xf32> to vector<16x128xbf16>
    %c0_12 = arith.constant 0 : index
    %c0_13 = arith.constant 0 : index
    %18 = vector.load %arg6[%c0_12, %c0_13] : memref<128x8xbf16, #tpu.memory_space<vmem>>, vector<128x8xbf16>
    %c0_14 = arith.constant 0 : index
    %c0_15 = arith.constant 0 : index
    %19 = vector.load %arg7[%c0_14, %c0_15] : memref<1x8xf32, #tpu.memory_space<vmem>>, vector<1x8xf32>
    %cst_16 = arith.constant dense<0.000000e+00> : vector<16x8xf32>
    %20 = tpu.matmul %17, %18, %cst_16 {dimension_numbers = #tpu.dot_dimension_numbers<[1], [0], [0], [1], [0, 0, 1, 1], [], []>} : vector<16x128xbf16>, vector<128x8xbf16>, vector<16x8xf32> -> vector<16x8xf32>
    %21 = vector.broadcast %19 : vector<1x8xf32> to vector<16x8xf32>
    %22 = arith.addf %20, %21 : vector<16x8xf32>
    %c0_17 = arith.constant 0 : index
    %c0_18 = arith.constant 0 : index
    %23 = vector.load %arg8[%c0_17, %c0_18] : memref<16x8xf32, #tpu.memory_space<vmem>>, vector<16x8xf32>
    tpu.vector_store %arg8[%c0_17, %c0_18], %22 {strides = array<i32>} : memref<16x8xf32, #tpu.memory_space<vmem>>, vector<16x8xf32>,
    return
  }
  func.func @transform_0(%arg0: i32) -> (i32, i32) {
    %c0_i32 = arith.constant 0 : i32
    %c0_i32_0 = arith.constant 0 : i32
    return %arg0, %c0_i32 : i32, i32
  }
  func.func @transform_1(%arg0: i32) -> (i32, i32) {
    %c0_i32 = arith.constant 0 : i32
    %c0_i32_0 = arith.constant 0 : i32
    %c0_i32_1 = arith.constant 0 : i32
    return %c0_i32, %c0_i32_0 : i32, i32
  }
  func.func @transform_2(%arg0: i32) -> (i32, i32) {
    %c0_i32 = arith.constant 0 : i32
    %c0_i32_0 = arith.constant 0 : i32
    %c0_i32_1 = arith.constant 0 : i32
    return %c0_i32, %c0_i32_0 : i32, i32
  }
  func.func @transform_3(%arg0: i32) -> (i32, i32) {
    %c0_i32 = arith.constant 0 : i32
    %c0_i32_0 = arith.constant 0 : i32
    %c0_i32_1 = arith.constant 0 : i32
    return %c0_i32, %c0_i32_0 : i32, i32
  }
  func.func @transform_4(%arg0: i32) -> (i32, i32) {
    %c0_i32 = arith.constant 0 : i32
    %c0_i32_0 = arith.constant 0 : i32
    %c0_i32_1 = arith.constant 0 : i32
    return %c0_i32, %c0_i32_0 : i32, i32
  }
  func.func @transform_5(%arg0: i32) -> (i32, i32) {
    %c0_i32 = arith.constant 0 : i32
    %c0_i32_0 = arith.constant 0 : i32
    %c0_i32_1 = arith.constant 0 : i32
    return %c0_i32, %c0_i32_0 : i32, i32
  }
  func.func @transform_6(%arg0: i32) -> (i32, i32) {
    %c0_i32 = arith.constant 0 : i32
    %c0_i32_0 = arith.constant 0 : i32
    %c0_i32_1 = arith.constant 0 : i32
    return %c0_i32, %c0_i32_0 : i32, i32
  }
  func.func @transform_7(%arg0: i32) -> (i32, i32) {
    %c0_i32 = arith.constant 0 : i32
    %c0_i32_0 = arith.constant 0 : i32
    return %arg0, %c0_i32 : i32, i32
  }
}

</mosaic_0001>

<bundles_post_ra>
// kernel: tpu_custom_call.1
= control target key start
LH: loop header
LB: loop body
LE: loop exit
PB: predicated region body
PF: predicated region fallthrough
CT: control target
= control target key end

     0   :  { %12 = vsyncpa [#allocation3], 0  ;;  %s475_s24 = smov [#allocation2]   ;;  %s621_s0 = inlined_call_operand.hbm [shape: f32[16,16], index: 0, kind: input, shape index: {}]   ;;  %s622_s1 = inlined_call_operand.vmem [shape: bf16[16,128], index: 1, kind: input, shape index: {}]   ;;  %s623_s2 = inlined_call_operand.vmem [shape: f32[1,128], index: 2, kind: input, shape index: {}]   ;;  %s624_s3 = inlined_call_operand.vmem [shape: bf16[128,128], index: 3, kind: input, shape index: {}]   ;;  %s625_s4 = inlined_call_operand.vmem [shape: f32[1,128], index: 4, kind: input, shape index: {}]   ;;  %s626_s5 = inlined_call_operand.vmem [shape: bf16[128,8], index: 5, kind: input, shape index: {}]   ;;  %s627_s6 = inlined_call_operand.vmem [shape: f32[1,8], index: 6, kind: input, shape index: {}]   ;;  %s628_s7 = inlined_call_operand.vmem [shape: f32[16,8], index: 7, kind: output, shape index: {}]  }
   0x1   :  { %s18_s25 = sshll.u32 %s475_s24, 4  ;;  %s451_s28 = scalar_lea.hbm %s621_s0, 256  ;;  %s19_s25 = int_to_ptr.vmem [resolvable:$true] %s18_s25 }
   0x2   :  { %p452_p0 = scmp.ne.s32.totalorder %s621_s0, %s451_s28  ;;  %p455_p1 = scmp.lt.u32.totalorder %s451_s28, %s621_s0 }
   0x4   :  { %p457_p2 = pnand %p455_p1, %p452_p0 }
   0x6   :  { %460 = shalt.err (!%p457_p2)
}
   0x7   :  { %s461_s10 = scalar_lea.vmem %s19_s25, 256  ;;  %p466_p4 = scmp.lt.s32.totalorder %s19_s25, %s19_s25 }
   0x8   :  { %p462_p3 = scmp.ne.s32.totalorder %s19_s25, %s461_s10  ;;  %p467_p5 = scmp.lt.s32.totalorder %s461_s10, %s461_s10 }
   0xa   :  { %p468_p6 = por %p467_p5, %p466_p4 }
   0xc   :  { %p469_p7 = pnand %p468_p6, %p462_p3 }
   0xe   :  { %472 = shalt.err (!%p469_p7)
}
   0xf   :  { %s476_s11 = smov 128   ;;  %s477_s12 = smov 8  }
  0x10   :  { %24 = dma.hbm_to_vmem [thread:$0]  %s621_s0, 256, %s19_s25, [#allocation3], %s476_s11, %s476_s11, %s477_s12  }
  0x11   :  { %473 = dma.done.wait [#allocation3], 256  }
  0x12   :  { %474 = vsyncadd [#allocation3], 4294967040  ;;  %v478_v0 = vmov 0.0   ;;  %vm479_vm0 = vmmov 0   ;;  %v434_v1 = vld [vmem:[%s622_s1] sm:$0xff]   ;;  %v42_v3 = vld [vmem:[#allocation2 + $0x8] sm:$0xff] }
  0x13   :  { %383 = vmatprep.subr.bf16.mxu0 %v478_v0  ;;  %385 = vmatprep.mubr.msk.bf16.mxu0 %vm479_vm0, %v478_v0  ;;  %v41_v2 = vld [vmem:[#allocation2] sm:$0xff]  ;;  %vm59_vm1 = vcmask 130048   ;;  %v436_v6 = vld [vmem:[%s624_s3 + $0x8] sm:$0xff]   ;;  %v437_v7 = vld [vmem:[%s624_s3 + $0x10] sm:$0xff]   ;;  %vm334_vm2 = vcmask 64512  }
  0x14   :  { %389 = vmatprep.subr.bf16.mxu1 %v478_v0  ;;  %405 = vmatprep.mubr.msk.bf16.mxu1 %vm479_vm0, %v478_v0  ;;  %v43_v4 = vpack.c.bf16 %v42_v3, %v41_v2  ;;  %v435_v5 = vld [vmem:[%s624_s3] sm:$0xff]   ;;  %v438_v8 = vld [vmem:[%s624_s3 + $0x18] sm:$0xff]   ;;  %v440_v10 = vld [vmem:[%s624_s3 + $0x28] sm:$0xff]  }
  0x15   :  { %384 = vmatpush3.bf16.msra.mxu0 %v434_v1  ;;  %390 = vmatpush3.bf16.msra.mxu1 %v435_v5  ;;  %v439_v9 = vld [vmem:[%s624_s3 + $0x20] sm:$0xff]   ;;  %v441_v11 = vld [vmem:[%s624_s3 + $0x30] sm:$0xff]   ;;  %v442_v12 = vld [vmem:[%s624_s3 + $0x38] sm:$0xff]  }
  0x16   :  { %409 = vmatprep.subr.bf16.mxu0 %v478_v0  ;;  %391 = vmatprep.subr.bf16.mxu1 %v478_v0  ;;  %v443_v13 = vld [vmem:[%s626_s5] sm:$0xff]   ;;  %v444_v14 = vld [vmem:[%s626_s5 + $0x8] sm:$0xff]   ;;  %v445_v15 = vld [vmem:[%s626_s5 + $0x10] sm:$0xff]  }
  0x17   :  { %v446_v16 = vld [vmem:[%s626_s5 + $0x18] sm:$0xff]   ;;  %v447_v17 = vld [vmem:[%s626_s5 + $0x20] sm:$0xff]   ;;  %v448_v18 = vld [vmem:[%s626_s5 + $0x28] sm:$0xff]  }
  0x18   :  { %386 = vmatmul.mubr.msk.bf16.vlgmr.msra.gmra.mrb[0].mxu0 %vm59_vm1, %v43_v4  ;;  %v342_v19 = vld [vmem:[%s623_s2] ss:$0 sm:$0xff]  ;;  %v449_v29 = vld [vmem:[%s626_s5 + $0x30] sm:$0xff]   ;;  %v450_v30 = vld [vmem:[%s626_s5 + $0x38] sm:$0xff]  }
  0x19   :  { %425 = vmatprep.mubr.msk.bf16.mxu0 %vm479_vm0, %v478_v0  ;;  %392 = vmatpush3.bf16.msra.mxu1 %v436_v6  ;;  %v345_v31 = vld [vmem:[%s625_s4] ss:$0 sm:$0xff] }
  0x1a   :  { %393 = vmatprep.subr.bf16.mxu1 %v478_v0  ;;  %410 = vmatpush3.bf16.msra.mxu0 %v443_v13  ;;  %v354_v41 = vld [vmem:[%s627_s6] ss:$0 sm:$0xff] }
  0x1b   :  { %411 = vmatprep.subr.bf16.mxu0 %v478_v0 }
  0x1d   :  { %394 = vmatpush3.bf16.msra.mxu1 %v437_v7 }
  0x1e   :  { %395 = vmatprep.subr.bf16.mxu1 %v478_v0  ;;  %412 = vmatpush3.bf16.msra.mxu0 %v444_v14 }
  0x1f   :  { %413 = vmatprep.subr.bf16.mxu0 %v478_v0 }
  0x21   :  { %396 = vmatpush3.bf16.msra.mxu1 %v438_v8 }
  0x22   :  { %397 = vmatprep.subr.bf16.mxu1 %v478_v0  ;;  %414 = vmatpush3.bf16.msra.mxu0 %v445_v15 }
  0x23   :  { %415 = vmatprep.subr.bf16.mxu0 %v478_v0 }
  0x25   :  { %398 = vmatpush3.bf16.msra.mxu1 %v439_v9 }
  0x26   :  { %399 = vmatprep.subr.bf16.mxu1 %v478_v0  ;;  %416 = vmatpush3.bf16.msra.mxu0 %v446_v16 }
  0x27   :  { %417 = vmatprep.subr.bf16.mxu0 %v478_v0 }
  0x29   :  { %400 = vmatpush3.bf16.msra.mxu1 %v440_v10 }
  0x2a   :  { %401 = vmatprep.subr.bf16.mxu1 %v478_v0  ;;  %418 = vmatpush3.bf16.msra.mxu0 %v447_v17 }
  0x2b   :  { %419 = vmatprep.subr.bf16.mxu0 %v478_v0 }
  0x2d   :  { %402 = vmatpush3.bf16.msra.mxu1 %v441_v11 }
  0x2e   :  { %403 = vmatprep.subr.bf16.mxu1 %v478_v0  ;;  %420 = vmatpush3.bf16.msra.mxu0 %v448_v18 }
  0x2f   :  { %421 = vmatprep.subr.bf16.mxu0 %v478_v0 }
  0x31   :  { %404 = vmatpush3.bf16.msra.mxu1 %v442_v12 }
  0x32   :  { %422 = vmatpush3.bf16.msra.mxu0 %v449_v29 }
  0x33   :  { %423 = vmatprep.subr.bf16.mxu0 %v478_v0 }
  0x36   :  { %424 = vmatpush3.bf16.msra.mxu0 %v450_v30 }
  0xeb   :  { %v97_v20 = vpop.f32.mrb[0].mxu0 }
  0xec   :  { %v98_v21 = vadd.f32 %v342_v19, %v97_v20  ;;  %v387_v22 = vpop.f32.mrb[1].mxu0 }
  0xed   :  { %v100_v23 = vpop.f32.mrb[2].mxu0 }
  0xee   :  { %v101_v24 = vadd.f32 %v342_v19, %v100_v23  ;;  %v388_v25 = vpop.f32.mrb[3].mxu0  ;;  %v104_v26 = vmax.f32 %v98_v21, 0.0 }
  0xf0   :  { %v105_v27 = vmax.f32 %v101_v24, 0.0 }
  0xf2   :  { %v106_v28 = vpack.c.bf16 %v105_v27, %v104_v26 }
  0xf4   :  { %406 = vmatmul.mubr.bf16.vlgmr.msra.gmra.mrb[0].mxu1 %v106_v28 }
 0x1c7   :  { %v212_v32 = vpop.f32.mrb[0].mxu1 }
 0x1c8   :  { %v213_v33 = vadd.f32 %v345_v31, %v212_v32  ;;  %v407_v34 = vpop.f32.mrb[1].mxu1 }
 0x1c9   :  { %v215_v35 = vpop.f32.mrb[2].mxu1 }
 0x1ca   :  { %v216_v36 = vadd.f32 %v345_v31, %v215_v35  ;;  %v408_v37 = vpop.f32.mrb[3].mxu1  ;;  %v219_v38 = vmax.f32 %v213_v33, 0.0 }
 0x1cc   :  { %v220_v39 = vmax.f32 %v216_v36, 0.0 }
 0x1ce   :  { %v221_v40 = vpack.c.bf16 %v220_v39, %v219_v38 }
 0x1d0   :  { %426 = vmatmul.mubr.bf16.vlgmr.msra.gmra.mrb[4].mxu0 %v221_v40 }
 0x2a3   :  { %v327_v42 = vpop.f32.mrb[4].mxu0 }
 0x2a4   :  { %v328_v43 = vadd.f32 %v354_v41, %v327_v42  ;;  %v427_v44 = vpop.f32.mrb[5].mxu0 }
 0x2a5   :  { %v330_v45 = vpop.f32.mrb[6].mxu0 }
 0x2a6   :  { %335 = vst.msk [vmem:[%s628_s7] sm:$0xff] %vm334_vm2, %v328_v43  ;;  %v331_v46 = vadd.f32 %v354_v41, %v330_v45  ;;  %v428_v47 = vpop.f32.mrb[7].mxu0 }
 0x2a8   :  { %336 = vst.msk [vmem:[%s628_s7 + $0x8] sm:$0xff] %vm334_vm2, %v331_v46 }
 0x2a9   :  { %341 = vsyncpa [#allocation3], 1 }

// kernel: tpu_custom_call.1
= control target key start
LH: loop header
LB: loop body
LE: loop exit
PB: predicated region body
PF: predicated region fallthrough
CT: control target
= control target key end

     0   :  { %12 = vsyncpa [#allocation3], 0  ;;  %s475_s24 = smov [#allocation2]   ;;  %s621_s0 = inlined_call_operand.hbm [shape: f32[16,16], index: 0, kind: input, shape index: {}]   ;;  %s622_s1 = inlined_call_operand.vmem [shape: bf16[16,128], index: 1, kind: input, shape index: {}]   ;;  %s623_s2 = inlined_call_operand.vmem [shape: f32[1,128], index: 2, kind: input, shape index: {}]   ;;  %s624_s3 = inlined_call_operand.vmem [shape: bf16[128,128], index: 3, kind: input, shape index: {}]   ;;  %s625_s4 = inlined_call_operand.vmem [shape: f32[1,128], index: 4, kind: input, shape index: {}]   ;;  %s626_s5 = inlined_call_operand.vmem [shape: bf16[128,8], index: 5, kind: input, shape index: {}]   ;;  %s627_s6 = inlined_call_operand.vmem [shape: f32[1,8], index: 6, kind: input, shape index: {}]   ;;  %s628_s7 = inlined_call_operand.vmem [shape: f32[16,8], index: 7, kind: output, shape index: {}]  }
   0x1   :  { %s18_s25 = sshll.u32 %s475_s24, 4  ;;  %s451_s28 = scalar_lea.hbm %s621_s0, 256  ;;  %s19_s25 = int_to_ptr.vmem [resolvable:$true] %s18_s25 }
   0x2   :  { %p452_p0 = scmp.ne.s32.totalorder %s621_s0, %s451_s28  ;;  %p455_p1 = scmp.lt.u32.totalorder %s451_s28, %s621_s0 }
   0x4   :  { %p457_p2 = pnand %p455_p1, %p452_p0 }
   0x6   :  { %460 = shalt.err (!%p457_p2)
}
   0x7   :  { %s461_s10 = scalar_lea.vmem %s19_s25, 256  ;;  %p466_p4 = scmp.lt.s32.totalorder %s19_s25, %s19_s25 }
   0x8   :  { %p462_p3 = scmp.ne.s32.totalorder %s19_s25, %s461_s10  ;;  %p467_p5 = scmp.lt.s32.totalorder %s461_s10, %s461_s10 }
   0xa   :  { %p468_p6 = por %p467_p5, %p466_p4 }
   0xc   :  { %p469_p7 = pnand %p468_p6, %p462_p3 }
   0xe   :  { %472 = shalt.err (!%p469_p7)
}
   0xf   :  { %s476_s11 = smov 128   ;;  %s477_s12 = smov 8  }
  0x10   :  { %24 = dma.hbm_to_vmem [thread:$0]  %s621_s0, 256, %s19_s25, [#allocation3], %s476_s11, %s476_s11, %s477_s12  }
  0x11   :  { %473 = dma.done.wait [#allocation3], 256  }
  0x12   :  { %474 = vsyncadd [#allocation3], 4294967040  ;;  %v478_v0 = vmov 0.0   ;;  %vm479_vm0 = vmmov 0   ;;  %v434_v1 = vld [vmem:[%s622_s1] sm:$0xff]   ;;  %v42_v3 = vld [vmem:[#allocation2 + $0x8] sm:$0xff] }
  0x13   :  { %383 = vmatprep.subr.bf16.mxu0 %v478_v0  ;;  %385 = vmatprep.mubr.msk.bf16.mxu0 %vm479_vm0, %v478_v0  ;;  %v41_v2 = vld [vmem:[#allocation2] sm:$0xff]  ;;  %vm59_vm1 = vcmask 130048   ;;  %v436_v6 = vld [vmem:[%s624_s3 + $0x8] sm:$0xff]   ;;  %v437_v7 = vld [vmem:[%s624_s3 + $0x10] sm:$0xff]   ;;  %vm334_vm2 = vcmask 64512  }
  0x14   :  { %389 = vmatprep.subr.bf16.mxu1 %v478_v0  ;;  %405 = vmatprep.mubr.msk.bf16.mxu1 %vm479_vm0, %v478_v0  ;;  %v43_v4 = vpack.c.bf16 %v42_v3, %v41_v2  ;;  %v435_v5 = vld [vmem:[%s624_s3] sm:$0xff]   ;;  %v438_v8 = vld [vmem:[%s624_s3 + $0x18] sm:$0xff]   ;;  %v440_v10 = vld [vmem:[%s624_s3 + $0x28] sm:$0xff]  }
  0x15   :  { %384 = vmatpush3.bf16.msra.mxu0 %v434_v1  ;;  %390 = vmatpush3.bf16.msra.mxu1 %v435_v5  ;;  %v439_v9 = vld [vmem:[%s624_s3 + $0x20] sm:$0xff]   ;;  %v441_v11 = vld [vmem:[%s624_s3 + $0x30] sm:$0xff]   ;;  %v442_v12 = vld [vmem:[%s624_s3 + $0x38] sm:$0xff]  }
  0x16   :  { %409 = vmatprep.subr.bf16.mxu0 %v478_v0  ;;  %391 = vmatprep.subr.bf16.mxu1 %v478_v0  ;;  %v443_v13 = vld [vmem:[%s626_s5] sm:$0xff]   ;;  %v444_v14 = vld [vmem:[%s626_s5 + $0x8] sm:$0xff]   ;;  %v445_v15 = vld [vmem:[%s626_s5 + $0x10] sm:$0xff]  }
  0x17   :  { %v446_v16 = vld [vmem:[%s626_s5 + $0x18] sm:$0xff]   ;;  %v447_v17 = vld [vmem:[%s626_s5 + $0x20] sm:$0xff]   ;;  %v448_v18 = vld [vmem:[%s626_s5 + $0x28] sm:$0xff]  }
  0x18   :  { %386 = vmatmul.mubr.msk.bf16.vlgmr.msra.gmra.mrb[0].mxu0 %vm59_vm1, %v43_v4  ;;  %v342_v19 = vld [vmem:[%s623_s2] ss:$0 sm:$0xff]  ;;  %v449_v29 = vld [vmem:[%s626_s5 + $0x30] sm:$0xff]   ;;  %v450_v30 = vld [vmem:[%s626_s5 + $0x38] sm:$0xff]  }
  0x19   :  { %425 = vmatprep.mubr.msk.bf16.mxu0 %vm479_vm0, %v478_v0  ;;  %392 = vmatpush3.bf16.msra.mxu1 %v436_v6  ;;  %v345_v31 = vld [vmem:[%s625_s4] ss:$0 sm:$0xff] }
  0x1a   :  { %393 = vmatprep.subr.bf16.mxu1 %v478_v0  ;;  %410 = vmatpush3.bf16.msra.mxu0 %v443_v13  ;;  %v354_v41 = vld [vmem:[%s627_s6] ss:$0 sm:$0xff] }
  0x1b   :  { %411 = vmatprep.subr.bf16.mxu0 %v478_v0 }
  0x1d   :  { %394 = vmatpush3.bf16.msra.mxu1 %v437_v7 }
  0x1e   :  { %395 = vmatprep.subr.bf16.mxu1 %v478_v0  ;;  %412 = vmatpush3.bf16.msra.mxu0 %v444_v14 }
  0x1f   :  { %413 = vmatprep.subr.bf16.mxu0 %v478_v0 }
  0x21   :  { %396 = vmatpush3.bf16.msra.mxu1 %v438_v8 }
  0x22   :  { %397 = vmatprep.subr.bf16.mxu1 %v478_v0  ;;  %414 = vmatpush3.bf16.msra.mxu0 %v445_v15 }
  0x23   :  { %415 = vmatprep.subr.bf16.mxu0 %v478_v0 }
  0x25   :  { %398 = vmatpush3.bf16.msra.mxu1 %v439_v9 }
  0x26   :  { %399 = vmatprep.subr.bf16.mxu1 %v478_v0  ;;  %416 = vmatpush3.bf16.msra.mxu0 %v446_v16 }
  0x27   :  { %417 = vmatprep.subr.bf16.mxu0 %v478_v0 }
  0x29   :  { %400 = vmatpush3.bf16.msra.mxu1 %v440_v10 }
  0x2a   :  { %401 = vmatprep.subr.bf16.mxu1 %v478_v0  ;;  %418 = vmatpush3.bf16.msra.mxu0 %v447_v17 }
  0x2b   :  { %419 = vmatprep.subr.bf16.mxu0 %v478_v0 }
  0x2d   :  { %402 = vmatpush3.bf16.msra.mxu1 %v441_v11 }
  0x2e   :  { %403 = vmatprep.subr.bf16.mxu1 %v478_v0  ;;  %420 = vmatpush3.bf16.msra.mxu0 %v448_v18 }
  0x2f   :  { %421 = vmatprep.subr.bf16.mxu0 %v478_v0 }
  0x31   :  { %404 = vmatpush3.bf16.msra.mxu1 %v442_v12 }
  0x32   :  { %422 = vmatpush3.bf16.msra.mxu0 %v449_v29 }
  0x33   :  { %423 = vmatprep.subr.bf16.mxu0 %v478_v0 }
  0x36   :  { %424 = vmatpush3.bf16.msra.mxu0 %v450_v30 }
  0xeb   :  { %v97_v20 = vpop.f32.mrb[0].mxu0 }
  0xec   :  { %v98_v21 = vadd.f32 %v342_v19, %v97_v20  ;;  %v387_v22 = vpop.f32.mrb[1].mxu0 }
  0xed   :  { %v100_v23 = vpop.f32.mrb[2].mxu0 }
  0xee   :  { %v101_v24 = vadd.f32 %v342_v19, %v100_v23  ;;  %v388_v25 = vpop.f32.mrb[3].mxu0  ;;  %v104_v26 = vmax.f32 %v98_v21, 0.0 }
  0xf0   :  { %v105_v27 = vmax.f32 %v101_v24, 0.0 }
  0xf2   :  { %v106_v28 = vpack.c.bf16 %v105_v27, %v104_v26 }
  0xf4   :  { %406 = vmatmul.mubr.bf16.vlgmr.msra.gmra.mrb[0].mxu1 %v106_v28 }
 0x1c7   :  { %v212_v32 = vpop.f32.mrb[0].mxu1 }
 0x1c8   :  { %v213_v33 = vadd.f32 %v345_v31, %v212_v32  ;;  %v407_v34 = vpop.f32.mrb[1].mxu1 }
 0x1c9   :  { %v215_v35 = vpop.f32.mrb[2].mxu1 }
 0x1ca   :  { %v216_v36 = vadd.f32 %v345_v31, %v215_v35  ;;  %v408_v37 = vpop.f32.mrb[3].mxu1  ;;  %v219_v38 = vmax.f32 %v213_v33, 0.0 }
 0x1cc   :  { %v220_v39 = vmax.f32 %v216_v36, 0.0 }
 0x1ce   :  { %v221_v40 = vpack.c.bf16 %v220_v39, %v219_v38 }
 0x1d0   :  { %426 = vmatmul.mubr.bf16.vlgmr.msra.gmra.mrb[4].mxu0 %v221_v40 }
 0x2a3   :  { %v327_v42 = vpop.f32.mrb[4].mxu0 }
 0x2a4   :  { %v328_v43 = vadd.f32 %v354_v41, %v327_v42  ;;  %v427_v44 = vpop.f32.mrb[5].mxu0 }
 0x2a5   :  { %v330_v45 = vpop.f32.mrb[6].mxu0 }
 0x2a6   :  { %335 = vst.msk [vmem:[%s628_s7] sm:$0xff] %vm334_vm2, %v328_v43  ;;  %v331_v46 = vadd.f32 %v354_v41, %v330_v45  ;;  %v428_v47 = vpop.f32.mrb[7].mxu0 }
 0x2a8   :  { %336 = vst.msk [vmem:[%s628_s7 + $0x8] sm:$0xff] %vm334_vm2, %v331_v46 }
 0x2a9   :  { %341 = vsyncpa [#allocation3], 1 }

</bundles_post_ra>
